<compile_context>
chip_gen: v5e
topology: v5e:2x2
jax: 0.10.0
libtpu: 0.0.40
codegen_flags: <defaults>
</compile_context>

<pallas_src>
import functools

import jax
import jax.numpy as jnp
from jax.experimental import pallas as pl
from jax.experimental.pallas import tpu as pltpu


def _resblock_kernel(x_ref, w1_ref, b1_ref, w2_ref, b2_ref, wpos_ref,
                     o_ref, *, width):
    # x_ref   : (C, H*W)   one image; channels on sublanes, flat spatial on lanes
    # w*_ref  : (3C, 3C)   bf16, layout [ky*C + c_out, kx*C + c_in]
    # b*_ref  : (C, 1)     f32
    # wpos_ref: (1, H*W)   int32, column index (p % W) of every lane
    # o_ref   : (C, H*W)
    C, HW = x_ref.shape
    W = width

    x = x_ref[...]                                  # f32: conv1 input + identity
    wpos = wpos_ref[...]
    not_first_col = wpos != 0                       # output column w != 0
    not_last_col = wpos != (W - 1)                  # output column w != W-1

    def conv3x3(inp, w_ref, b_ref):
        xb = inp.astype(jnp.bfloat16)               # MXU operand in bf16
        zc = jnp.zeros((C, 1), jnp.bfloat16)
        # Horizontal taps with zero "same" padding along W (flat lane shifts,
        # row-crossing lanes masked off via the static column masks).
        left = jnp.where(not_first_col,
                         jnp.concatenate([zc, xb[:, :HW - 1]], axis=1), 0.0)
        right = jnp.where(not_last_col,
                          jnp.concatenate([xb[:, 1:], zc], axis=1), 0.0)
        # (3C, HW) slab, rows = kx*C + c_in  -> one deep-K matmul on the MXU.
        hslab = jnp.concatenate([left, xb, right], axis=0)
        y = jnp.dot(w_ref[...], hslab,
                    preferred_element_type=jnp.float32)        # (3C, HW) f32
        # Fold the three kernel rows into the output by shifting whole rows
        # (zero fill implements the top/bottom "same" padding).
        zr = jnp.zeros((C, W), jnp.float32)
        top = jnp.concatenate([zr, y[0:C, :HW - W]], axis=1)         # ky = 0
        bot = jnp.concatenate([y[2 * C:3 * C, W:], zr], axis=1)      # ky = 2
        return top + y[C:2 * C] + bot + b_ref[...]

    mid = jnp.maximum(conv3x3(x, w1_ref, b1_ref), 0.0)   # ReLU, f32
    out = x + conv3x3(mid, w2_ref, b2_ref)               # residual add, f32
    o_ref[...] = out.astype(o_ref.dtype)


@jax.jit
def residual_block_nobn(x, w1, b1, w2, b2):
    """x: (N, C, H, W) f32.  w*: (C, C, 3, 3) PyTorch OIHW.  b*: (C,)."""
    N, C, H, W = x.shape
    HW = H * W

    x_flat = x.reshape(N, C, HW)                    # free (contiguous) reshape

    def prep_w(w):
        # (co, ci, ky, kx) -> [ky*C + co, kx*C + ci], bf16 for the MXU.
        return jnp.transpose(w, (2, 0, 3, 1)).reshape(3 * C, 3 * C).astype(jnp.bfloat16)

    w1r, w2r = prep_w(w1), prep_w(w2)
    b1r = b1.reshape(C, 1).astype(jnp.float32)
    b2r = b2.reshape(C, 1).astype(jnp.float32)
    wpos = (jnp.arange(HW, dtype=jnp.int32) % W).reshape(1, HW)

    kernel = functools.partial(_resblock_kernel, width=W)

    out = pl.pallas_call(
        kernel,
        out_shape=jax.ShapeDtypeStruct((N, C, HW), x.dtype),
        grid_spec=pltpu.PrefetchScalarGridSpec(
            num_scalar_prefetch=0,
            grid=(N,),
            in_specs=[
                pl.BlockSpec((pl.Squeezed(), C, HW), lambda n: (n, 0, 0)),
                pl.BlockSpec((3 * C, 3 * C), lambda n: (0, 0)),
                pl.BlockSpec((C, 1), lambda n: (0, 0)),
                pl.BlockSpec((3 * C, 3 * C), lambda n: (0, 0)),
                pl.BlockSpec((C, 1), lambda n: (0, 0)),
                pl.BlockSpec((1, HW), lambda n: (0, 0)),
            ],
            out_specs=pl.BlockSpec((pl.Squeezed(), C, HW), lambda n: (n, 0, 0)),
        ),
        compiler_params=pltpu.CompilerParams(
            dimension_semantics=("parallel",)),
        cost_estimate=pl.CostEstimate(
            flops=4 * N * HW * 9 * C * C,
            transcendentals=0,
            bytes_accessed=2 * N * C * HW * 4),
    )(x_flat, w1r, b1r, w2r, b2r, wpos)

    return out.reshape(N, C, H, W)


def _reference(x, w1, b1, w2, b2):
    """Pure-JAX f32 reference (same math as the PyTorch forward)."""
    dn = ("NCHW", "OIHW", "NCHW")
    y = jax.lax.conv_general_dilated(x, w1, (1, 1), "SAME", dimension_numbers=dn)
    y = y + b1.reshape(1, -1, 1, 1)
    y = jnp.maximum(y, 0.0)
    y = jax.lax.conv_general_dilated(y, w2, (1, 1), "SAME", dimension_numbers=dn)
    y = y + b2.reshape(1, -1, 1, 1)
    return x + y


if __name__ == "__main__":
    # Small shapes consistent with the module (nc channels, square spatial).
    N, C, H, W = 2, 32, 16, 16

    key = jax.random.PRNGKey(0)
    kx, kw1, kw2, kb1, kb2 = jax.random.split(key, 5)

    x = jax.random.normal(kx, (N, C, H, W), dtype=jnp.float32)

    # Kaiming-normal fan_in (gain sqrt(2)), scaled by 0.1 as in initialize_weights;
    # small nonzero biases to exercise the bias path (module init zeroes them).
    fan_in = C * 3 * 3
    std = (2.0 / fan_in) ** 0.5
    w1 = jax.random.normal(kw1, (C, C, 3, 3), dtype=jnp.float32) * std * 0.1
    w2 = jax.random.normal(kw2, (C, C, 3, 3), dtype=jnp.float32) * std * 0.1
    b1 = jax.random.normal(kb1, (C,), dtype=jnp.float32) * 0.01
    b2 = jax.random.normal(kb2, (C,), dtype=jnp.float32) * 0.01

    out = jax.block_until_ready(residual_block_nobn(x, w1, b1, w2, b2))
    ref = _reference(x, w1, b1, w2, b2)

    assert out.shape == (N, C, H, W)
    err = float(jnp.max(jnp.abs(out - ref)))
    assert err < 2e-2, f"mismatch vs reference conv: {err}"

    print("KERNEL_OK")
</pallas_src>

<mosaic_0001>
module attributes {stable_mosaic.version = 11 : i64} {
  func.func @_resblock_kernel(%arg0: i32, %arg1: memref<1x32x256xf32, #tpu.memory_space<vmem>>, %arg2: memref<96x96xbf16, #tpu.memory_space<vmem>>, %arg3: memref<32x1xf32, #tpu.memory_space<vmem>>, %arg4: memref<96x96xbf16, #tpu.memory_space<vmem>>, %arg5: memref<32x1xf32, #tpu.memory_space<vmem>>, %arg6: memref<1x256xi32, #tpu.memory_space<vmem>>, %arg7: memref<1x32x256xf32, #tpu.memory_space<vmem>>) attributes {dimension_semantics = [#tpu.dimension_semantics<parallel>], iteration_bounds = array<i64: 2>, scalar_prefetch = 0 : i64, scratch_operands = 0 : i64, tpu.core_type = #tpu.core_type<tc>, window_params = [{transform_indices = @transform_0, window_bounds = array<i64: 1, 32, 256>}, {pipeline_mode = #tpu.pipeline_mode<synchronous>, transform_indices = @transform_1, window_bounds = array<i64: 96, 96>}, {pipeline_mode = #tpu.pipeline_mode<synchronous>, transform_indices = @transform_2, window_bounds = array<i64: 32, 1>}, {pipeline_mode = #tpu.pipeline_mode<synchronous>, transform_indices = @transform_3, window_bounds = array<i64: 96, 96>}, {pipeline_mode = #tpu.pipeline_mode<synchronous>, transform_indices = @transform_4, window_bounds = array<i64: 32, 1>}, {pipeline_mode = #tpu.pipeline_mode<synchronous>, transform_indices = @transform_5, window_bounds = array<i64: 1, 256>}, {transform_indices = @transform_6, window_bounds = array<i64: 1, 32, 256>}]} {
    %c0 = arith.constant 0 : index
    %c0_0 = arith.constant 0 : index
    %c0_1 = arith.constant 0 : index
    %0 = vector.load %arg1[%c0, %c0_0, %c0_1] : memref<1x32x256xf32, #tpu.memory_space<vmem>>, vector<1x32x256xf32>
    %1 = vector.shape_cast %0 : vector<1x32x256xf32> to vector<32x256xf32>
    %c0_2 = arith.constant 0 : index
    %c0_3 = arith.constant 0 : index
    %2 = vector.load %arg6[%c0_2, %c0_3] : memref<1x256xi32, #tpu.memory_space<vmem>>, vector<1x256xi32>
    %c0_i32 = arith.constant 0 : i32
    %3 = vector.broadcast %c0_i32 : i32 to vector<1x256xi32>
    %4 = arith.cmpi ne, %2, %3 : vector<1x256xi32>
    %c15_i32 = arith.constant 15 : i32
    %5 = vector.broadcast %c15_i32 : i32 to vector<1x256xi32>
    %6 = arith.cmpi ne, %2, %5 : vector<1x256xi32>
    %7 = arith.truncf %1 : vector<32x256xf32> to vector<32x256xbf16>
    %cst = arith.constant 0.000000e+00 : bf16
    %8 = vector.broadcast %cst : bf16 to vector<32x1xbf16>
    %9 = vector.extract_strided_slice %7 {offsets = [0, 0], sizes = [32, 255], strides = [1, 1]} : vector<32x256xbf16> to vector<32x255xbf16>
    %10 = tpu.concatenate %8, %9 in 1 : vector<32x1xbf16>, vector<32x255xbf16> -> vector<32x256xbf16>
    %cst_4 = arith.constant 0.000000e+00 : f32
    %11 = arith.truncf %cst_4 : f32 to bf16
    %12 = vector.shape_cast %4 : vector<1x256xi1> to vector<1x256xi1>
    %13 = vector.broadcast %12 : vector<1x256xi1> to vector<32x256xi1>
    %14 = vector.broadcast %11 : bf16 to vector<32x256xbf16>
    %15 = arith.select %13, %10, %14 : vector<32x256xi1>, vector<32x256xbf16>
    %16 = vector.extract_strided_slice %7 {offsets = [0, 1], sizes = [32, 255], strides = [1, 1]} : vector<32x256xbf16> to vector<32x255xbf16>
    %17 = tpu.concatenate %16, %8 in 1 : vector<32x255xbf16>, vector<32x1xbf16> -> vector<32x256xbf16>
    %cst_5 = arith.constant 0.000000e+00 : f32
    %18 = arith.truncf %cst_5 : f32 to bf16
    %19 = vector.shape_cast %6 : vector<1x256xi1> to vector<1x256xi1>
    %20 = vector.broadcast %19 : vector<1x256xi1> to vector<32x256xi1>
    %21 = vector.broadcast %18 : bf16 to vector<32x256xbf16>
    %22 = arith.select %20, %17, %21 : vector<32x256xi1>, vector<32x256xbf16>
    %23 = tpu.concatenate %15, %7, %22 in 0 : vector<32x256xbf16>, vector<32x256xbf16>, vector<32x256xbf16> -> vector<96x256xbf16>
    %c0_6 = arith.constant 0 : index
    %c0_7 = arith.constant 0 : index
    %24 = vector.load %arg2[%c0_6, %c0_7] : memref<96x96xbf16, #tpu.memory_space<vmem>>, vector<96x96xbf16>
    %cst_8 = arith.constant dense<0.000000e+00> : vector<96x256xf32>
    %25 = tpu.matmul %24, %23, %cst_8 {dimension_numbers = #tpu.dot_dimension_numbers<[1], [0], [0], [1], [0, 0, 1, 1], [], []>} : vector<96x96xbf16>, vector<96x256xbf16>, vector<96x256xf32> -> vector<96x256xf32>
    %cst_9 = arith.constant 0.000000e+00 : f32
    %26 = vector.broadcast %cst_9 : f32 to vector<32x16xf32>
    %27 = vector.extract_strided_slice %25 {offsets = [0, 0], sizes = [32, 240], strides = [1, 1]} : vector<96x256xf32> to vector<32x240xf32>
    %28 = tpu.concatenate %26, %27 in 1 : vector<32x16xf32>, vector<32x240xf32> -> vector<32x256xf32>
    %29 = vector.extract_strided_slice %25 {offsets = [64, 16], sizes = [32, 240], strides = [1, 1]} : vector<96x256xf32> to vector<32x240xf32>
    %30 = tpu.concatenate %29, %26 in 1 : vector<32x240xf32>, vector<32x16xf32> -> vector<32x256xf32>
    %31 = vector.extract_strided_slice %25 {offsets = [32, 0], sizes = [32, 256], strides = [1, 1]} : vector<96x256xf32> to vector<32x256xf32>
    %32 = arith.addf %28, %31 : vector<32x256xf32>
    %33 = arith.addf %32, %30 : vector<32x256xf32>
    %c0_10 = arith.constant 0 : index
    %c0_11 = arith.constant 0 : index
    %34 = vector.load %arg3[%c0_10, %c0_11] : memref<32x1xf32, #tpu.memory_space<vmem>>, vector<32x1xf32>
    %35 = vector.broadcast %34 : vector<32x1xf32> to vector<32x256xf32>
    %36 = arith.addf %33, %35 : vector<32x256xf32>
    %cst_12 = arith.constant 0.000000e+00 : f32
    %37 = vector.broadcast %cst_12 : f32 to vector<32x256xf32>
    %38 = arith.maximumf %36, %37 : vector<32x256xf32>
    %39 = arith.truncf %38 : vector<32x256xf32> to vector<32x256xbf16>
    %cst_13 = arith.constant 0.000000e+00 : bf16
    %40 = vector.broadcast %cst_13 : bf16 to vector<32x1xbf16>
    %41 = vector.extract_strided_slice %39 {offsets = [0, 0], sizes = [32, 255], strides = [1, 1]} : vector<32x256xbf16> to vector<32x255xbf16>
    %42 = tpu.concatenate %40, %41 in 1 : vector<32x1xbf16>, vector<32x255xbf16> -> vector<32x256xbf16>
    %cst_14 = arith.constant 0.000000e+00 : f32
    %43 = arith.truncf %cst_14 : f32 to bf16
    %44 = vector.shape_cast %4 : vector<1x256xi1> to vector<1x256xi1>
    %45 = vector.broadcast %44 : vector<1x256xi1> to vector<32x256xi1>
    %46 = vector.broadcast %43 : bf16 to vector<32x256xbf16>
    %47 = arith.select %45, %42, %46 : vector<32x256xi1>, vector<32x256xbf16>
    %48 = vector.extract_strided_slice %39 {offsets = [0, 1], sizes = [32, 255], strides = [1, 1]} : vector<32x256xbf16> to vector<32x255xbf16>
    %49 = tpu.concatenate %48, %40 in 1 : vector<32x255xbf16>, vector<32x1xbf16> -> vector<32x256xbf16>
    %cst_15 = arith.constant 0.000000e+00 : f32
    %50 = arith.truncf %cst_15 : f32 to bf16
    %51 = vector.shape_cast %6 : vector<1x256xi1> to vector<1x256xi1>
    %52 = vector.broadcast %51 : vector<1x256xi1> to vector<32x256xi1>
    %53 = vector.broadcast %50 : bf16 to vector<32x256xbf16>
    %54 = arith.select %52, %49, %53 : vector<32x256xi1>, vector<32x256xbf16>
    %55 = tpu.concatenate %47, %39, %54 in 0 : vector<32x256xbf16>, vector<32x256xbf16>, vector<32x256xbf16> -> vector<96x256xbf16>
    %c0_16 = arith.constant 0 : index
    %c0_17 = arith.constant 0 : index
    %56 = vector.load %arg4[%c0_16, %c0_17] : memref<96x96xbf16, #tpu.memory_space<vmem>>, vector<96x96xbf16>
    %cst_18 = arith.constant dense<0.000000e+00> : vector<96x256xf32>
    %57 = tpu.matmul %56, %55, %cst_18 {dimension_numbers = #tpu.dot_dimension_numbers<[1], [0], [0], [1], [0, 0, 1, 1], [], []>} : vector<96x96xbf16>, vector<96x256xbf16>, vector<96x256xf32> -> vector<96x256xf32>
    %cst_19 = arith.constant 0.000000e+00 : f32
    %58 = vector.broadcast %cst_19 : f32 to vector<32x16xf32>
    %59 = vector.extract_strided_slice %57 {offsets = [0, 0], sizes = [32, 240], strides = [1, 1]} : vector<96x256xf32> to vector<32x240xf32>
    %60 = tpu.concatenate %58, %59 in 1 : vector<32x16xf32>, vector<32x240xf32> -> vector<32x256xf32>
    %61 = vector.extract_strided_slice %57 {offsets = [64, 16], sizes = [32, 240], strides = [1, 1]} : vector<96x256xf32> to vector<32x240xf32>
    %62 = tpu.concatenate %61, %58 in 1 : vector<32x240xf32>, vector<32x16xf32> -> vector<32x256xf32>
    %63 = vector.extract_strided_slice %57 {offsets = [32, 0], sizes = [32, 256], strides = [1, 1]} : vector<96x256xf32> to vector<32x256xf32>
    %64 = arith.addf %60, %63 : vector<32x256xf32>
    %65 = arith.addf %64, %62 : vector<32x256xf32>
    %c0_20 = arith.constant 0 : index
    %c0_21 = arith.constant 0 : index
    %66 = vector.load %arg5[%c0_20, %c0_21] : memref<32x1xf32, #tpu.memory_space<vmem>>, vector<32x1xf32>
    %67 = vector.broadcast %66 : vector<32x1xf32> to vector<32x256xf32>
    %68 = arith.addf %65, %67 : vector<32x256xf32>
    %69 = arith.addf %1, %68 : vector<32x256xf32>
    %c0_22 = arith.constant 0 : index
    %c0_23 = arith.constant 0 : index
    %c0_24 = arith.constant 0 : index
    %70 = vector.load %arg7[%c0_22, %c0_23, %c0_24] : memref<1x32x256xf32, #tpu.memory_space<vmem>>, vector<1x32x256xf32>
    %71 = vector.shape_cast %70 : vector<1x32x256xf32> to vector<32x256xf32>
    %72 = vector.shape_cast %69 : vector<32x256xf32> to vector<1x32x256xf32>
    tpu.vector_store %arg7[%c0_22, %c0_23, %c0_24], %72 {strides = array<i32>} : memref<1x32x256xf32, #tpu.memory_space<vmem>>, vector<1x32x256xf32>,
    return
  }
  func.func @transform_0(%arg0: i32) -> (i32, i32, i32) {
    %c0_i32 = arith.constant 0 : i32
    %c0_i32_0 = arith.constant 0 : i32
    %c0_i32_1 = arith.constant 0 : i32
    return %arg0, %c0_i32, %c0_i32_0 : i32, i32, i32
  }
  func.func @transform_1(%arg0: i32) -> (i32, i32) {
    %c0_i32 = arith.constant 0 : i32
    %c0_i32_0 = arith.constant 0 : i32
    %c0_i32_1 = arith.constant 0 : i32
    return %c0_i32, %c0_i32_0 : i32, i32
  }
  func.func @transform_2(%arg0: i32) -> (i32, i32) {
    %c0_i32 = arith.constant 0 : i32
    %c0_i32_0 = arith.constant 0 : i32
    %c0_i32_1 = arith.constant 0 : i32
    return %c0_i32, %c0_i32_0 : i32, i32
  }
  func.func @transform_3(%arg0: i32) -> (i32, i32) {
    %c0_i32 = arith.constant 0 : i32
    %c0_i32_0 = arith.constant 0 : i32
    %c0_i32_1 = arith.constant 0 : i32
    return %c0_i32, %c0_i32_0 : i32, i32
  }
  func.func @transform_4(%arg0: i32) -> (i32, i32) {
    %c0_i32 = arith.constant 0 : i32
    %c0_i32_0 = arith.constant 0 : i32
    %c0_i32_1 = arith.constant 0 : i32
    return %c0_i32, %c0_i32_0 : i32, i32
  }
  func.func @transform_5(%arg0: i32) -> (i32, i32) {
    %c0_i32 = arith.constant 0 : i32
    %c0_i32_0 = arith.constant 0 : i32
    %c0_i32_1 = arith.constant 0 : i32
    return %c0_i32, %c0_i32_0 : i32, i32
  }
  func.func @transform_6(%arg0: i32) -> (i32, i32, i32) {
    %c0_i32 = arith.constant 0 : i32
    %c0_i32_0 = arith.constant 0 : i32
    %c0_i32_1 = arith.constant 0 : i32
    return %arg0, %c0_i32, %c0_i32_0 : i32, i32, i32
  }
}

</mosaic_0001>

<bundles_post_ra>
// kernel: residual_block_nobn.1
= control target key start
LH: loop header
LB: loop body
LE: loop exit
PB: predicated region body
PF: predicated region fallthrough
CT: control target
= control target key end

     0   :  { %s1228_s21 = smov 0   ;;  %s1563_s0 = inlined_call_operand.vmem [shape: f32[2,32,256], index: 0, kind: input, shape index: {}]   ;;  %s1564_s1 = inlined_call_operand.vmem [shape: bf16[96,96], index: 1, kind: input, shape index: {}]   ;;  %s1565_s2 = inlined_call_operand.vmem [shape: f32[32,1], index: 2, kind: input, shape index: {}]   ;;  %s1566_s3 = inlined_call_operand.vmem [shape: bf16[96,96], index: 3, kind: input, shape index: {}]   ;;  %s1567_s4 = inlined_call_operand.vmem [shape: f32[32,1], index: 4, kind: input, shape index: {}]   ;;  %s1568_s5 = inlined_call_operand.vmem [shape: s32[1,256], index: 5, kind: input, shape index: {}]   ;;  %s1569_s6 = inlined_call_operand.vmem [shape: f32[2,32,256], index: 6, kind: output, shape index: {}]  }
   0x1 LB: > { %s1067_s22 = sadd.s32 4294967295, %s1186_s21   ;;  %p1071_p0 = scmp.ge.s32.totalorder %s1186_s21, 1  ;;  %s1186_s21 = sphi %s1228_s21, %s16_s21  }
   0x2   : > { %p212_p1 = scmp.lt.s32.totalorder %s1186_s21, 3 }
   0x4   : > { %p213_p2 = pnand %p1071_p0, %p212_p1 }
   0x5   : > { %p242_p3 = scmp.lt.s32.totalorder (!%p213_p2), %s1067_s22, 1  ;;  %s1188_s27 = smov (!%p213_p2), 127  }
   0x6   : > { %216 = sbr.rel (%p213_p2) target bundleno = 1005 (0x3ed), region = 44  ;;  %s1189_s28 = smov (!%p213_p2), 1  }
   0x7   : > { %s1192_s29 = smov (!%p213_p2), 112  }
   0xb   : > { %s1579_s22 = smov (!%p242_p3, %s1067_s22), 1  ;;  %v1190_v24 = vmov 0   ;;  %v263_v25 = vld [vmem:[%s1568_s5] sm:$0x3]  ;;  %vm342_vm12 = vcmask 1039360  }
   0xc   : > { %s1150_s23 = sshll.u32 %s1579_s22, 6  ;;  %1177 = vset.pattern.permute.xlu2 %v1190_v24  ;;  %1178 = vset.pattern.permute.xlu0 %v1190_v24  ;;  %vm265_vm0 = vcmp.ne.s32.totalorder %v263_v25, 15  ;;  %vm264_vm4 = vcmp.ne.s32.totalorder %v263_v25, 0  ;;  %v318_v35 = vunpack.c.l.b16 %v1190_v24  ;;  %v319_v36 = vunpack.c.h.b16 %v1190_v24  ;;  %v1156_v25 = vld [vmem:[%s1564_s1 + $0x20] sm:$0xff] }
   0xd   : > { %s246_s26 = scalar_lea.vmem %s1563_s0, %s1150_s23  ;;  %1179 = vset.pattern.permute.xlu1 %v1190_v24  ;;  %v354_v26 = vsel %vm265_vm0, 1, %v1190_v24  ;;  %v307_v31 = vsel %vm264_vm4, 1, %v1190_v24  ;;  %s1526_s11 = scalar_lea.vmem %s1569_s6, %s1150_s23 }
   0xe   : > { %v1244_v0 = vld [vmem:[%s246_s26 + $0x20] sm:$0xff]  ;;  %v1246_v1 = vld [vmem:[%s246_s26 + $0x28] sm:$0xff]  ;;  %v1248_v2 = vld [vmem:[%s246_s26 + $0x30] sm:$0xff]  ;;  %v355_v27 = vperm.slane %v354_v26, 0  ;;  %v356_v28 = vperm.slane %v354_v26, 1  ;;  %v308_v33 = vperm.slane %v307_v31, 0 }
   0xf   : > { %v1250_v3 = vld [vmem:[%s246_s26 + $0x38] sm:$0xff]  ;;  %v268_v4 = vpack.c.bf16 %v1246_v1, %v1244_v0  ;;  %v1254_v5 = vld [vmem:[%s246_s26] sm:$0xff]  ;;  %v1256_v6 = vld [vmem:[%s246_s26 + $0x8] sm:$0xff]  ;;  %v309_v34 = vperm.slane %v307_v31, 1 }
  0x10   : > { %v269_v7 = vpack.c.bf16 %v1250_v3, %v1248_v2  ;;  %v1260_v8 = vld [vmem:[%s246_s26 + $0x10] sm:$0xff]  ;;  %v1262_v9 = vld [vmem:[%s246_s26 + $0x18] sm:$0xff]  ;;  %v266_v10 = vpack.c.bf16 %v1256_v6, %v1254_v5  ;;  %vm357_vm1 = vcmp.eq.s32.totalorder %v355_v27, 1  ;;  %vm358_vm2 = vcmp.eq.s32.totalorder %v356_v28, 1  ;;  %v1157_v26 = vld [vmem:[%s1564_s1 + $0x28] sm:$0xff]  ;;  %s1191_s26 = smov 16  }
  0x11   : > { %v278_v11 = vunpack.c.l.b16 %v268_v4  ;;  %v267_v12 = vpack.c.bf16 %v1262_v9, %v1260_v8  ;;  %v279_v18 = vunpack.c.h.b16 %v268_v4  ;;  %vm359_vm3 = vmpackc.low %vm358_vm2, %vm357_vm1  ;;  %vm310_vm5 = vcmp.eq.s32.totalorder %v308_v33, 1  ;;  %v625_v27 = vld [vmem:[%s1565_s2 + $0x18] sm:$0xff] }
  0x12   : > { %v280_v13 = vunpack.c.l.b16 %v269_v7  ;;  %v274_v14 = vunpack.c.l.b16 %v266_v10  ;;  %v281_v19 = vunpack.c.h.b16 %v269_v7  ;;  %v275_v20 = vunpack.c.h.b16 %v266_v10  ;;  %v1161_v4 = vld [vmem:[%s1566_s3 + $0x18] sm:$0xff] }
  0x13   : > { %v276_v15 = vunpack.c.l.b16 %v267_v12  ;;  %v277_v21 = vunpack.c.h.b16 %v267_v12  ;;  %v360_v29 = vsel %vm359_vm3, 65537, %v1190_v24  ;;  %vm311_vm6 = vcmp.eq.s32.totalorder %v309_v34, 1 }
  0x14   : > { %v1268_v16 = vpack.c.b16 %v280_v13, %v278_v11  ;;  %v1278_v22 = vpack.c.b16 %v281_v19, %v279_v18  ;;  %v361_v30 = vperm.slane %v360_v29, 0  ;;  %v362_v32 = vperm.slane %v360_v29, 4  ;;  %vm312_vm11 = vmpackc.low %vm311_vm6, %vm310_vm5  ;;  %v1160_v13 = vld [vmem:[%s1566_s3 + $0x10] sm:$0xff] }
  0x15   : > { %v1270_v17 = vpack.c.b16 %v276_v15, %v274_v14  ;;  %v1280_v23 = vpack.c.b16 %v277_v21, %v275_v20  ;;  %v313_v46 = vsel %vm312_vm11, 65537, %v1190_v24  ;;  %vm294_vm1 = vcmask 7168   ;;  %v1152_v20 = vld [vmem:[%s1564_s1] sm:$0xff]  ;;  %v1153_v21 = vld [vmem:[%s1564_s1 + $0x8] sm:$0xff]  ;;  %v624_v24 = vld [vmem:[%s1565_s2 + $0x10] sm:$0xff] }
  0x16   : > { %338 = vrot.lane.b32.xlu0 %v1268_v16, %s1188_s27  ;;  %290 = vrot.lane.b32.xlu2 %v1268_v16, %s1189_s28  ;;  %v363_v37 = vunpack.c.l.b16 %v361_v30  ;;  %v364_v38 = vunpack.c.h.b16 %v361_v30  ;;  %v370_v40 = vunpack.c.l.b16 %v362_v32  ;;  %v371_v41 = vunpack.c.h.b16 %v362_v32 }
  0x17   : > { %334 = vrot.lane.b32.xlu1 %v1270_v17, %s1188_s27  ;;  %v314_v55 = vperm.slane %v313_v46, 0  ;;  %v315_v57 = vperm.slane %v313_v46, 4  ;;  %vm427_vm6 = vcmask 785408  }
  0x18   : > { %vm367_vm7 = vcmp.ne.s32.totalorder %v363_v37, %v318_v35  ;;  %vm368_vm8 = vcmp.ne.s32.totalorder %v364_v38, %v319_v36  ;;  %vm374_vm9 = vcmp.ne.s32.totalorder %v370_v40, %v318_v35  ;;  %vm375_vm10 = vcmp.ne.s32.totalorder %v371_v41, %v319_v36 }
  0x19   : > { %vm1295_vm13 = vmpackc.low %vm368_vm8, %vm367_vm7  ;;  %v316_v59 = vunpack.c.l.b16 %v314_v55  ;;  %v317_v60 = vunpack.c.h.b16 %v314_v55  ;;  %v323_v61 = vunpack.c.l.b16 %v315_v57  ;;  %v324_v62 = vunpack.c.h.b16 %v315_v57  ;;  %v622_v55 = vld [vmem:[%s1565_s2] sm:$0xff] }
  0x1a   : > { %vm1299_vm14 = vmpackc.low %vm375_vm10, %vm374_vm9  ;;  %vm548_vm7 = vcmask 130048   ;;  %vm589_vm8 = vcmask 916480  }
  0x1b   : > { %vm320_vm15 = vcmp.ne.s32.totalorder %v316_v59, %v318_v35  ;;  %vm321_vm0 = vcmp.ne.s32.totalorder %v317_v60, %v319_v36  ;;  %vm327_vm2 = vcmp.ne.s32.totalorder %v323_v61, %v318_v35  ;;  %vm328_vm3 = vcmp.ne.s32.totalorder %v324_v62, %v319_v36 }
  0x1c   : > { %vm1317_vm4 = vmpackc.low %vm321_vm0, %vm320_vm15 }
  0x1d   : > { %vm1325_vm5 = vmpackc.low %vm328_vm3, %vm327_vm2 }
  0x1e   : > { %340 = vrot.lane.b32.xlu0 %v1278_v22, %s1188_s27  ;;  %292 = vrot.lane.b32.xlu2 %v1278_v22, %s1189_s28 }
  0x1f   : > { %336 = vrot.lane.b32.xlu1 %v1280_v23, %s1188_s27 }
  0x26   : > { %286 = vrot.lane.b32.xlu0 %v1270_v17, %s1189_s28  ;;  %638 = vperm.xlu2 %1177, %v624_v24  }
  0x27   : > { %288 = vrot.lane.b32.xlu1 %v1280_v23, %s1189_s28 }
  0x2e   : > { %643 = vperm.xlu0 %1178, %v625_v27  }
  0x70   : > { %v291_v50 = vpop.permute.xlu2 %290 }
  0x71   : > { %v305_v11 = vsel %vm294_vm1, 0, %v291_v50 }
  0x78   : > { %v293_v63 = vpop.permute.xlu2 %292 }
  0x79   : > { %v296_v12 = vsel %vm294_vm1, %v291_v50, %v293_v63 }
  0x88   : > { %v339_v39 = vpop.permute.xlu0 %338 }
  0x89   : > { %v335_v42 = vpop.permute.xlu1 %334 }
  0x90   : > { %v341_v45 = vpop.permute.xlu0 %340 }
  0x91   : > { %v337_v47 = vpop.permute.xlu1 %336  ;;  %v344_v48 = vsel %vm342_vm12, %v339_v39, %v341_v45  ;;  %v352_v49 = vsel %vm342_vm12, %v341_v45, 0 }
  0x92   : > { %v379_v51 = vsel %vm1295_vm13, %v344_v48, 0  ;;  %v380_v52 = vsel %vm1299_vm14, %v352_v49, 0  ;;  %v349_v53 = vsel %vm342_vm12, %v337_v47, 0  ;;  %v343_v54 = vsel %vm342_vm12, %v335_v42, %v337_v47 }
  0x93   : > { %448 = vmatpush.bf16.msra.mxu0 %v379_v51  ;;  %487 = vmatpush.bf16.msra.mxu1 %v380_v52  ;;  %v378_v56 = vsel %vm1299_vm14, %v349_v53, 0  ;;  %v377_v58 = vsel %vm1295_vm13, %v343_v54, 0  ;;  %v623_v52 = vld [vmem:[%s1565_s2 + $0x8] sm:$0xff] }
  0x97   : > { %449 = vmatpush.bf16.msra.mxu0 %v377_v58  ;;  %488 = vmatpush.bf16.msra.mxu1 %v378_v56  ;;  %v639_v56 = vpop.permute.xlu2 %638 }
  0x98   : > { %v287_v7 = vpop.permute.xlu0 %286 }
  0x99   : > { %v289_v10 = vpop.permute.xlu1 %288  ;;  %v302_v14 = vsel %vm294_vm1, 0, %v287_v7 }
  0x9a   : > { %v295_v15 = vsel %vm294_vm1, %v287_v7, %v289_v10  ;;  %v330_v18 = vsel %vm1317_vm4, %v302_v14, 0 }
  0x9b   : > { %450 = vmatpush.bf16.msra.mxu0 %v1268_v16  ;;  %489 = vmatpush.bf16.msra.mxu1 %v1278_v22  ;;  %v332_v16 = vsel %vm1317_vm4, %v305_v11, 0  ;;  %v331_v19 = vsel %vm1325_vm5, %v295_v15, 0  ;;  %v1154_v22 = vld [vmem:[%s1564_s1 + $0x10] sm:$0xff] }
  0x9f   : > { %451 = vmatpush.bf16.msra.mxu0 %v1270_v17  ;;  %490 = vmatpush.bf16.msra.mxu1 %v1280_v23  ;;  %v333_v17 = vsel %vm1325_vm5, %v296_v12, 0  ;;  %v1155_v23 = vld [vmem:[%s1564_s1 + $0x18] sm:$0xff] }
  0xa0   : > { %v644_v61 = vpop.permute.xlu0 %643 }
  0xa3   : > { %452 = vmatpush.bf16.msra.mxu0 %v332_v16  ;;  %491 = vmatpush.bf16.msra.mxu1 %v333_v17 }
  0xa7   : > { %453 = vmatpush.bf16.msra.mxu0 %v330_v18  ;;  %492 = vmatpush.bf16.msra.mxu1 %v331_v19 }
  0xaa   : > { %1100 = vmatmul.msk.bf16.vlgmr.msra.gmra.mxu0 %vm427_vm6, %v1152_v20  ;;  %1106 = vmatmul.msk.bf16.vlgmr.msra.gmra.mxu1 %vm427_vm6, %v1152_v20 }
  0xba   : > { %1101 = vmatmul.msk.bf16.gmra.mxu0 %vm427_vm6, %v1153_v21  ;;  %1107 = vmatmul.msk.bf16.gmra.mxu1 %vm427_vm6, %v1153_v21 }
  0xca   : > { %1102 = vmatmul.msk.bf16.gmra.mxu0 %vm427_vm6, %v1154_v22  ;;  %1108 = vmatmul.msk.bf16.gmra.mxu1 %vm427_vm6, %v1154_v22 }
  0xda   : > { %1103 = vmatmul.msk.bf16.gmra.mxu0 %vm427_vm6, %v1155_v23  ;;  %1109 = vmatmul.msk.bf16.gmra.mxu1 %vm427_vm6, %v1155_v23 }
  0xea   : > { %1104 = vmatmul.msk.bf16.gmra.mxu0 %vm427_vm6, %v1156_v25  ;;  %1110 = vmatmul.msk.bf16.gmra.mxu1 %vm427_vm6, %v1156_v25 }
  0xfa   : > { %1105 = vmatmul.msk.bf16.gmra.mxu0 %vm427_vm6, %v1157_v26  ;;  %1111 = vmatmul.msk.bf16.gmra.mxu1 %vm427_vm6, %v1157_v26 }
 0x127   : > { %v455_v28 = vpop.f32.mrf.mxu0  ;;  %v494_v29 = vpop.f32.mrf.mxu1 }
 0x128   : > { %532 = vrot.lane.b32.xlu1 %v455_v28, %s1191_s26  ;;  %534 = vrot.lane.b32.xlu2 %v494_v29, %s1191_s26 }
 0x12f   : > { %v457_v30 = vpop.f32.mrf.mxu0  ;;  %v496_v31 = vpop.f32.mrf.mxu1 }
 0x130   : > { %536 = vrot.lane.b32.xlu0 %v457_v30, %s1191_s26  ;;  %538 = vrot.lane.b32.xlu1 %v496_v31, %s1191_s26 }
 0x137   : > { %v460_v32 = vpop.f32.mrf.mxu0  ;;  %v499_v33 = vpop.f32.mrf.mxu1 }
 0x138   : > { %540 = vrot.lane.b32.xlu2 %v460_v32, %s1191_s26  ;;  %542 = vrot.lane.b32.xlu0 %v499_v33, %s1191_s26 }
 0x13f   : > { %v462_v34 = vpop.f32.mrf.mxu0  ;;  %v501_v35 = vpop.f32.mrf.mxu1 }
 0x140   : > { %544 = vrot.lane.b32.xlu1 %v462_v34, %s1191_s26  ;;  %546 = vrot.lane.b32.xlu2 %v501_v35, %s1191_s26 }
 0x147   : > { %v1383_v36 = vpop.f32.mrf.mxu0  ;;  %v1385_v37 = vpop.f32.mrf.mxu1 }
 0x14f   : > { %v467_v38 = vpop.f32.mrf.mxu0  ;;  %v506_v39 = vpop.f32.mrf.mxu1 }
 0x157   : > { %v470_v40 = vpop.f32.mrf.mxu0  ;;  %v509_v41 = vpop.f32.mrf.mxu1 }
 0x15f   : > { %v472_v42 = vpop.f32.mrf.mxu0  ;;  %v511_v45 = vpop.f32.mrf.mxu1 }
 0x167   : > { %v475_v46 = vpop.f32.mrf.mxu0  ;;  %v514_v47 = vpop.f32.mrf.mxu1 }
 0x168   : > { %573 = vrot.lane.b32.xlu1 %v475_v46, %s1192_s29  ;;  %575 = vrot.lane.b32.xlu2 %v514_v47, %s1192_s29 }
 0x16f   : > { %v477_v48 = vpop.f32.mrf.mxu0  ;;  %v516_v49 = vpop.f32.mrf.mxu1 }
 0x170   : > { %577 = vrot.lane.b32.xlu1 %v477_v48, %s1192_s29 }
 0x177   : > { %v480_v50 = vpop.f32.mrf.mxu0  ;;  %v519_v51 = vpop.f32.mrf.mxu1 }
 0x178   : > { %581 = vrot.lane.b32.xlu0 %v480_v50, %s1192_s29  ;;  %583 = vrot.lane.b32.xlu1 %v519_v51, %s1192_s29 }
 0x17f   : > { %v482_v53 = vpop.f32.mrf.mxu0  ;;  %v521_v54 = vpop.f32.mrf.mxu1 }
 0x180   : > { %585 = vrot.lane.b32.xlu2 %v482_v53, %s1192_s29  ;;  %633 = vperm.xlu1 %1179, %v623_v52  }
 0x181   : > { %587 = vrot.lane.b32.xlu0 %v521_v54, %s1192_s29 }
 0x182   : > { %v535_v58 = vpop.permute.xlu2 %534 }
 0x188   : > { %579 = vrot.lane.b32.xlu2 %v516_v49, %s1192_s29 }
 0x189   : > { %628 = vperm.xlu0 %1178, %v622_v55  }
 0x192   : > { %v541_v59 = vpop.permute.xlu2 %540 }
 0x193   : > { %v563_v16 = vsel %vm548_vm7, 0.0, %v541_v59 }
 0x194   : > { %v610_v20 = vadd.f32 %v563_v16, %v470_v40 }
 0x19a   : > { %v533_v57 = vpop.permute.xlu1 %532  ;;  %v547_v63 = vpop.permute.xlu2 %546 }
 0x19b   : > { %v561_v46 = vsel %vm548_vm7, 0.0, %v533_v57 }
 0x1a2   : > { %v539_v60 = vpop.permute.xlu1 %538  ;;  %v537_v7 = vpop.permute.xlu0 %536 }
 0x1a3   : > { %v562_v27 = vsel %vm548_vm7, 0.0, %v537_v7  ;;  %v550_v28 = vsel %vm548_vm7, %v537_v7, %v539_v60 }
 0x1a4   : > { %v608_v35 = vadd.f32 %v562_v27, %v467_v38  ;;  %v609_v40 = vadd.f32 %v550_v28, %v506_v39 }
 0x1aa   : > { %v543_v12 = vpop.permute.xlu0 %542 }
 0x1ab   : > { %v551_v17 = vsel %vm548_vm7, %v541_v59, %v543_v12 }
 0x1ac   : > { %v611_v21 = vadd.f32 %v551_v17, %v509_v41  ;;  %v549_v41 = vsel %vm548_vm7, %v533_v57, %v535_v58 }
 0x1b2   : > { %v545_v62 = vpop.permute.xlu1 %544 }
 0x1b3   : > { %v552_v29 = vsel %vm548_vm7, %v545_v62, %v547_v63  ;;  %v564_v30 = vsel %vm548_vm7, 0.0, %v545_v62  ;;  %v606_v62 = vadd.f32 %v561_v46, %v1383_v36  ;;  %v607_v63 = vadd.f32 %v549_v41, %v1385_v37 }
 0x1b4   : > { %v612_v47 = vadd.f32 %v564_v30, %v472_v42  ;;  %v613_v48 = vadd.f32 %v552_v29, %v511_v45 }
 0x1c2   : > { %v576_v11 = vpop.permute.xlu2 %575 }
 0x1c3   : > { %v602_v58 = vsel %vm589_vm8, %v576_v11, 0.0 }
 0x1da   : > { %v574_v10 = vpop.permute.xlu1 %573  ;;  %v586_v15 = vpop.permute.xlu2 %585 }
 0x1db   : > { %v590_v57 = vsel %vm589_vm8, %v574_v10, %v576_v11 }
 0x1dc   : > { %v614_v16 = vadd.f32 %v606_v62, %v590_v57 }
 0x1e2   : > { %v578_v14 = vpop.permute.xlu1 %577  ;;  %v580_v26 = vpop.permute.xlu2 %579 }
 0x1e3   : > { %v603_v31 = vsel %vm589_vm8, %v580_v26, 0.0  ;;  %v591_v32 = vsel %vm589_vm8, %v578_v14, %v580_v26 }
 0x1e4   : > { %v617_v51 = vadd.f32 %v609_v40, %v603_v31  ;;  %v616_v52 = vadd.f32 %v608_v35, %v591_v32 }
 0x1ea   : > { %v582_v18 = vpop.permute.xlu0 %581  ;;  %v584_v19 = vpop.permute.xlu1 %583 }
 0x1eb   : > { %v592_v22 = vsel %vm589_vm8, %v582_v18, %v584_v19  ;;  %v604_v23 = vsel %vm589_vm8, %v584_v19, 0.0 }
 0x1ec   : > { %v618_v24 = vadd.f32 %v610_v20, %v592_v22  ;;  %v619_v25 = vadd.f32 %v611_v21, %v604_v23 }
 0x1ee   : > { %v650_v33 = vadd.f32 %v639_v56, %v618_v24  ;;  %v651_v34 = vadd.f32 %v639_v56, %v619_v25 }
 0x1f0   : > { %v658_v55 = vmax.f32 %v650_v33, 0.0  ;;  %v659_v59 = vmax.f32 %v651_v34, 0.0  ;;  %v964_v34 = vld [vmem:[%s1567_s4] sm:$0xff] }
 0x1f2   : > { %v634_v50 = vpop.permute.xlu1 %633  ;;  %v664_v7 = vpack.c.bf16 %v659_v59, %v658_v55 }
 0x1f3   : > { %v588_v49 = vpop.permute.xlu0 %587  ;;  %v648_v38 = vadd.f32 %v634_v50, %v616_v52  ;;  %v649_v39 = vadd.f32 %v634_v50, %v617_v51 }
 0x1f4   : > { %v593_v53 = vsel %vm589_vm8, %v586_v15, %v588_v49  ;;  %v605_v54 = vsel %vm589_vm8, %v588_v49, 0.0  ;;  %v615_v15 = vadd.f32 %v607_v63, %v602_v58  ;;  %v675_v23 = vunpack.c.h.b16 %v664_v7  ;;  %v1159_v63 = vld [vmem:[%s1566_s3 + $0x8] sm:$0xff] }
 0x1f5   : > { %v620_v60 = vadd.f32 %v612_v47, %v593_v53  ;;  %v621_v56 = vadd.f32 %v613_v48, %v605_v54  ;;  %v656_v17 = vmax.f32 %v648_v38, 0.0  ;;  %v657_v18 = vmax.f32 %v649_v39, 0.0 }
 0x1f6   : > { %v674_v10 = vunpack.c.l.b16 %v664_v7  ;;  %v1162_v7 = vld [vmem:[%s1566_s3 + $0x20] sm:$0xff] }
 0x1f7   : > { %v652_v42 = vadd.f32 %v644_v61, %v620_v60  ;;  %v653_v45 = vadd.f32 %v644_v61, %v621_v56  ;;  %v663_v61 = vpack.c.bf16 %v657_v18, %v656_v17 }
 0x1f9   : > { %v660_v12 = vmax.f32 %v652_v42, 0.0  ;;  %v661_v14 = vmax.f32 %v653_v45, 0.0  ;;  %v672_v29 = vunpack.c.l.b16 %v663_v61  ;;  %v673_v32 = vunpack.c.h.b16 %v663_v61  ;;  %v1158_v45 = vld [vmem:[%s1566_s3] sm:$0xff] }
 0x1fb   : > { %v665_v19 = vpack.c.bf16 %v661_v14, %v660_v12  ;;  %v629_v20 = vpop.permute.xlu0 %628  ;;  %v1163_v12 = vld [vmem:[%s1566_s3 + $0x28] sm:$0xff] }
 0x1fc   : > { %v646_v21 = vadd.f32 %v629_v20, %v614_v16  ;;  %v647_v22 = vadd.f32 %v629_v20, %v615_v15 }
 0x1fd   : > { %v677_v24 = vunpack.c.h.b16 %v665_v19  ;;  %v676_v11 = vunpack.c.l.b16 %v665_v19 }
 0x1fe   : > { %v654_v25 = vmax.f32 %v646_v21, 0.0  ;;  %v655_v36 = vmax.f32 %v647_v22, 0.0 }
 0x1ff   : > { %v681_v26 = vpack.c.b16 %v677_v24, %v675_v23  ;;  %v680_v37 = vpack.c.b16 %v676_v11, %v674_v10 }
 0x200   : > { %v662_v27 = vpack.c.bf16 %v655_v36, %v654_v25 }
 0x201   : > { %710 = vrot.lane.b32.xlu0 %v681_v26, %s1188_s27  ;;  %708 = vrot.lane.b32.xlu2 %v680_v37, %s1188_s27 }
 0x202   : > { %v670_v28 = vunpack.c.l.b16 %v662_v27  ;;  %v671_v30 = vunpack.c.h.b16 %v662_v27 }
 0x204   : > { %v678_v31 = vpack.c.b16 %v672_v29, %v670_v28  ;;  %v679_v33 = vpack.c.b16 %v673_v32, %v671_v30 }
 0x206   : > { %704 = vrot.lane.b32.xlu1 %v678_v31, %s1188_s27 }
 0x209   : > { %686 = vrot.lane.b32.xlu0 %v680_v37, %s1189_s28  ;;  %706 = vrot.lane.b32.xlu2 %v679_v33, %s1188_s27 }
 0x20e   : > { %688 = vrot.lane.b32.xlu1 %v681_v26, %s1189_s28 }
 0x211   : > { %684 = vrot.lane.b32.xlu0 %v679_v33, %s1189_s28  ;;  %682 = vrot.lane.b32.xlu2 %v678_v31, %s1189_s28 }
 0x219   : > { %970 = vperm.xlu2 %1177, %v964_v34   ;;  %v965_v34 = vld [vmem:[%s1567_s4 + $0x8] sm:$0xff] }
 0x25b   : > { %v709_v35 = vpop.permute.xlu2 %708 }
 0x263   : > { %v707_v40 = vpop.permute.xlu2 %706 }
 0x264   : > { %v717_v50 = vsel %vm342_vm12, %v707_v40, 0 }
 0x265   : > { %v723_v52 = vsel %vm1299_vm14, %v717_v50, 0 }
 0x26b   : > { %v683_v44 = vpop.permute.xlu2 %682 }
 0x26c   : > { %v695_v57 = vsel %vm294_vm1, 0, %v683_v44 }
 0x26d   : > { %v700_v62 = vsel %vm1317_vm4, %v695_v57, 0 }
 0x273   : > { %v711_v41 = vpop.permute.xlu0 %710 }
 0x274   : > { %v713_v46 = vsel %vm342_vm12, %v709_v35, %v711_v41  ;;  %v720_v47 = vsel %vm342_vm12, %v711_v41, 0  ;;  %v966_v35 = vld [vmem:[%s1567_s4 + $0x10] sm:$0xff]  ;;  %v971_v41 = vpop.permute.xlu2 %970 }
 0x275   : > { %v724_v48 = vsel %vm1295_vm13, %v713_v46, 0  ;;  %v725_v49 = vsel %vm1299_vm14, %v720_v47, 0 }
 0x276   : > { %792 = vmatpush.bf16.msra.mxu2 %v724_v48  ;;  %831 = vmatpush.bf16.msra.mxu3 %v725_v49 }
 0x278   : > { %v705_v51 = vpop.permute.xlu1 %704 }
 0x279   : > { %v712_v53 = vsel %vm342_vm12, %v705_v51, %v707_v40 }
 0x27a   : > { %832 = vmatpush.bf16.msra.mxu3 %v723_v52  ;;  %v722_v54 = vsel %vm1295_vm13, %v712_v53, 0 }
 0x27b   : > { %v687_v55 = vpop.permute.xlu0 %686  ;;  %793 = vmatpush.bf16.msra.mxu2 %v722_v54 }
 0x27c   : > { %v698_v38 = vsel %vm294_vm1, 0, %v687_v55 }
 0x27d   : > { %v702_v43 = vsel %vm1317_vm4, %v698_v38, 0 }
 0x27e   : > { %833 = vmatpush.bf16.msra.mxu3 %v681_v26 }
 0x27f   : > { %794 = vmatpush.bf16.msra.mxu2 %v680_v37 }
 0x280   : > { %v689_v59 = vpop.permute.xlu1 %688 }
 0x281   : > { %v691_v60 = vsel %vm294_vm1, %v687_v55, %v689_v59 }
 0x282   : > { %834 = vmatpush.bf16.msra.mxu3 %v679_v33  ;;  %v703_v39 = vsel %vm1325_vm5, %v691_v60, 0 }
 0x283   : > { %v685_v56 = vpop.permute.xlu0 %684  ;;  %795 = vmatpush.bf16.msra.mxu2 %v678_v31  ;;  %v967_v31 = vld [vmem:[%s1567_s4 + $0x18] sm:$0xff] }
 0x284   : > { %v690_v58 = vsel %vm294_vm1, %v683_v44, %v685_v56 }
 0x285   : > { %v701_v42 = vsel %vm1325_vm5, %v690_v58, 0 }
 0x286   : > { %835 = vmatpush.bf16.msra.mxu3 %v703_v39 }
 0x287   : > { %796 = vmatpush.bf16.msra.mxu2 %v702_v43 }
 0x28a   : > { %836 = vmatpush.bf16.msra.mxu3 %v701_v42 }
 0x28b   : > { %797 = vmatpush.bf16.msra.mxu2 %v700_v62 }
 0x28d   : > { %1142 = vmatmul.msk.bf16.vlgmr.msra.gmra.mxu3 %vm427_vm6, %v1158_v45 }
 0x28e   : > { %1136 = vmatmul.msk.bf16.vlgmr.msra.gmra.mxu2 %vm427_vm6, %v1158_v45 }
 0x29d   : > { %1143 = vmatmul.msk.bf16.gmra.mxu3 %vm427_vm6, %v1159_v63 }
 0x29e   : > { %1137 = vmatmul.msk.bf16.gmra.mxu2 %vm427_vm6, %v1159_v63 }
 0x2ad   : > { %1144 = vmatmul.msk.bf16.gmra.mxu3 %vm427_vm6, %v1160_v13 }
 0x2ae   : > { %1138 = vmatmul.msk.bf16.gmra.mxu2 %vm427_vm6, %v1160_v13 }
 0x2bd   : > { %1145 = vmatmul.msk.bf16.gmra.mxu3 %vm427_vm6, %v1161_v4 }
 0x2be   : > { %1139 = vmatmul.msk.bf16.gmra.mxu2 %vm427_vm6, %v1161_v4 }
 0x2cd   : > { %1146 = vmatmul.msk.bf16.gmra.mxu3 %vm427_vm6, %v1162_v7 }
 0x2ce   : > { %1140 = vmatmul.msk.bf16.gmra.mxu2 %vm427_vm6, %v1162_v7 }
 0x2dd   : > { %1147 = vmatmul.msk.bf16.gmra.mxu3 %vm427_vm6, %v1163_v12 }
 0x2de   : > { %1141 = vmatmul.msk.bf16.gmra.mxu2 %vm427_vm6, %v1163_v12 }
 0x310   : > { %v838_v14 = vpop.f32.mrf.mxu3 }
 0x311   : > { %v799_v15 = vpop.f32.mrf.mxu2  ;;  %878 = vrot.lane.b32.xlu2 %v838_v14, %s1191_s26 }
 0x312   : > { %876 = vrot.lane.b32.xlu1 %v799_v15, %s1191_s26 }
 0x318   : > { %v840_v16 = vpop.f32.mrf.mxu3 }
 0x319   : > { %v801_v17 = vpop.f32.mrf.mxu2 }
 0x31a   : > { %880 = vrot.lane.b32.xlu0 %v801_v17, %s1191_s26  ;;  %882 = vrot.lane.b32.xlu1 %v840_v16, %s1191_s26 }
 0x320   : > { %v843_v18 = vpop.f32.mrf.mxu3 }
 0x321   : > { %v804_v19 = vpop.f32.mrf.mxu2 }
 0x322   : > { %884 = vrot.lane.b32.xlu2 %v804_v19, %s1191_s26  ;;  %886 = vrot.lane.b32.xlu0 %v843_v18, %s1191_s26 }
 0x328   : > { %v845_v20 = vpop.f32.mrf.mxu3 }
 0x329   : > { %v806_v21 = vpop.f32.mrf.mxu2 }
 0x32a   : > { %888 = vrot.lane.b32.xlu1 %v806_v21, %s1191_s26  ;;  %890 = vrot.lane.b32.xlu2 %v845_v20, %s1191_s26 }
 0x330   : > { %v848_v22 = vpop.f32.mrf.mxu3 }
 0x331   : > { %v809_v23 = vpop.f32.mrf.mxu2 }
 0x338   : > { %v1492_v24 = vpop.f32.mrf.mxu3 }
 0x339   : > { %v1494_v10 = vpop.f32.mrf.mxu2 }
 0x340   : > { %v1496_v11 = vpop.f32.mrf.mxu3 }
 0x341   : > { %v1498_v61 = vpop.f32.mrf.mxu2 }
 0x348   : > { %v855_v25 = vpop.f32.mrf.mxu3 }
 0x349   : > { %v816_v36 = vpop.f32.mrf.mxu2 }
 0x350   : > { %v858_v26 = vpop.f32.mrf.mxu3 }
 0x351   : > { %v819_v37 = vpop.f32.mrf.mxu2  ;;  %918 = vrot.lane.b32.xlu1 %v858_v26, %s1192_s29 }
 0x352   : > { %916 = vrot.lane.b32.xlu0 %v819_v37, %s1192_s29 }
 0x358   : > { %v860_v27 = vpop.f32.mrf.mxu3 }
 0x359   : > { %v821_v28 = vpop.f32.mrf.mxu2 }
 0x35a   : > { %920 = vrot.lane.b32.xlu2 %v821_v28, %s1192_s29  ;;  %922 = vrot.lane.b32.xlu0 %v860_v27, %s1192_s29 }
 0x360   : > { %v863_v29 = vpop.f32.mrf.mxu3 }
 0x361   : > { %v824_v30 = vpop.f32.mrf.mxu2 }
 0x362   : > { %924 = vrot.lane.b32.xlu1 %v824_v30, %s1192_s29  ;;  %926 = vrot.lane.b32.xlu2 %v863_v29, %s1192_s29 }
 0x368   : > { %v865_v32 = vpop.f32.mrf.mxu3 }
 0x369   : > { %v826_v33 = vpop.f32.mrf.mxu2 }
 0x36a   : > { %928 = vrot.lane.b32.xlu0 %v826_v33, %s1192_s29  ;;  %985 = vperm.xlu2 %1177, %v967_v31  }
 0x36b   : > { %930 = vrot.lane.b32.xlu1 %v865_v32, %s1192_s29  ;;  %v879_v46 = vpop.permute.xlu2 %878 }
 0x372   : > { %975 = vperm.xlu0 %1178, %v965_v34  }
 0x373   : > { %980 = vperm.xlu1 %1179, %v966_v35  }
 0x37c   : > { %v885_v49 = vpop.permute.xlu2 %884 }
 0x37d   : > { %v906_v20 = vsel %vm548_vm7, 0.0, %v885_v49 }
 0x37e   : > { %v952_v32 = vadd.f32 %v906_v20, %v1498_v61 }
 0x384   : > { %v877_v40 = vpop.permute.xlu1 %876  ;;  %v891_v59 = vpop.permute.xlu2 %890 }
 0x385   : > { %v892_v52 = vsel %vm548_vm7, %v877_v40, %v879_v46  ;;  %v904_v53 = vsel %vm548_vm7, 0.0, %v877_v40 }
 0x386   : > { %v949_v54 = vadd.f32 %v892_v52, %v848_v22  ;;  %v948_v60 = vadd.f32 %v904_v53, %v809_v23 }
 0x38c   : > { %v881_v47 = vpop.permute.xlu0 %880  ;;  %v883_v48 = vpop.permute.xlu1 %882 }
 0x38d   : > { %v905_v15 = vsel %vm548_vm7, 0.0, %v881_v47  ;;  %v893_v16 = vsel %vm548_vm7, %v881_v47, %v883_v48 }
 0x38e   : > { %v950_v26 = vadd.f32 %v905_v15, %v1494_v10  ;;  %v951_v37 = vadd.f32 %v893_v16, %v1492_v24 }
 0x394   : > { %v887_v51 = vpop.permute.xlu0 %886 }
 0x395   : > { %v894_v21 = vsel %vm548_vm7, %v885_v49, %v887_v51 }
 0x396   : > { %v953_v33 = vadd.f32 %v894_v21, %v1496_v11 }
 0x39c   : > { %v889_v50 = vpop.permute.xlu1 %888 }
 0x39d   : > { %v895_v7 = vsel %vm548_vm7, %v889_v50, %v891_v59  ;;  %v907_v12 = vsel %vm548_vm7, 0.0, %v889_v50 }
 0x39e   : > { %v954_v17 = vadd.f32 %v907_v12, %v816_v36  ;;  %v955_v18 = vadd.f32 %v895_v7, %v855_v25 }
 0x3b4   : > { %v921_v62 = vpop.permute.xlu2 %920 }
 0x3bc   : > { %v927_v4 = vpop.permute.xlu2 %926 }
 0x3bd   : > { %v946_v28 = vsel %vm589_vm8, %v927_v4, 0.0 }
 0x3be   : > { %v961_v46 = vadd.f32 %v953_v33, %v946_v28 }
 0x3c3   : > { %v919_v55 = vpop.permute.xlu1 %918 }
 0x3c4   : > { %v944_v56 = vsel %vm589_vm8, %v919_v55, 0.0  ;;  %v917_v38 = vpop.permute.xlu0 %916  ;;  %v986_v27 = vpop.permute.xlu2 %985 }
 0x3c5   : > { %v957_v44 = vadd.f32 %v949_v54, %v944_v56  ;;  %v932_v39 = vsel %vm589_vm8, %v917_v38, %v919_v55 }
 0x3c6   : > { %v956_v43 = vadd.f32 %v948_v60, %v932_v39 }
 0x3c7   : > { %v989_v58 = vadd.f32 %v971_v41, %v957_v44 }
 0x3c8   : > { %v988_v57 = vadd.f32 %v971_v41, %v956_v43 }
 0x3c9   : > { %v997_v42 = vadd.f32 %v989_v58, %v1256_v6 }
 0x3ca   : > { %v996_v45 = vadd.f32 %v988_v57, %v1254_v5 }
 0x3cb   : > { %1005 = vst [vmem:[%s1526_s11 + $0x8] sm:$0xff] %v997_v42 }
 0x3cc   : > { %1004 = vst [vmem:[%s1526_s11] sm:$0xff] %v996_v45  ;;  %v923_v63 = vpop.permute.xlu0 %922 }
 0x3cd   : > { %v933_v36 = vsel %vm589_vm8, %v921_v62, %v923_v63  ;;  %v945_v25 = vsel %vm589_vm8, %v923_v63, 0.0 }
 0x3ce   : > { %v958_v34 = vadd.f32 %v950_v26, %v933_v36  ;;  %v959_v35 = vadd.f32 %v951_v37, %v945_v25 }
 0x3d4   : > { %v925_v13 = vpop.permute.xlu1 %924 }
 0x3d5   : > { %v934_v29 = vsel %vm589_vm8, %v925_v13, %v927_v4 }
 0x3d6   : > { %v960_v41 = vadd.f32 %v952_v32, %v934_v29 }
 0x3dc   : > { %v929_v14 = vpop.permute.xlu0 %928 }
 0x3dd   : > { %v931_v6 = vpop.permute.xlu1 %930 }
 0x3de   : > { %v935_v5 = vsel %vm589_vm8, %v929_v14, %v931_v6  ;;  %v947_v19 = vsel %vm589_vm8, %v931_v6, 0.0 }
 0x3df   : > { %v962_v22 = vadd.f32 %v954_v17, %v935_v5  ;;  %v963_v23 = vadd.f32 %v955_v18, %v947_v19 }
 0x3e1   : > { %v994_v30 = vadd.f32 %v986_v27, %v962_v22  ;;  %v995_v31 = vadd.f32 %v986_v27, %v963_v23 }
 0x3e3   : > { %v1002_v10 = vadd.f32 %v994_v30, %v1248_v2  ;;  %v1003_v24 = vadd.f32 %v995_v31, %v1250_v3 }
 0x3e4   : > { %v976_v40 = vpop.permute.xlu0 %975 }
 0x3e5   : > { %1010 = vst [vmem:[%s1526_s11 + $0x30] sm:$0xff] %v1002_v10  ;;  %v990_v47 = vadd.f32 %v976_v40, %v958_v34  ;;  %v991_v48 = vadd.f32 %v976_v40, %v959_v35  ;;  %v981_v49 = vpop.permute.xlu1 %980 }
 0x3e6   : > { %1011 = vst [vmem:[%s1526_s11 + $0x38] sm:$0xff] %v1003_v24  ;;  %v992_v61 = vadd.f32 %v981_v49, %v960_v41  ;;  %v993_v11 = vadd.f32 %v981_v49, %v961_v46 }
 0x3e7   : > { %v998_v2 = vadd.f32 %v990_v47, %v1260_v8  ;;  %v999_v3 = vadd.f32 %v991_v48, %v1262_v9 }
 0x3e8   : > { %v1000_v50 = vadd.f32 %v992_v61, %v1244_v0  ;;  %v1001_v51 = vadd.f32 %v993_v11, %v1246_v1 }
 0x3e9   : > { %1006 = vst [vmem:[%s1526_s11 + $0x10] sm:$0xff] %v998_v2 }
 0x3ea   : > { %1007 = vst [vmem:[%s1526_s11 + $0x18] sm:$0xff] %v999_v3 }
 0x3eb   : > { %1008 = vst [vmem:[%s1526_s11 + $0x20] sm:$0xff] %v1000_v50 }
 0x3ec   : > { %1009 = vst [vmem:[%s1526_s11 + $0x28] sm:$0xff] %v1001_v51 }
 0x3ed PF: > { %s16_s21 = sadd.s32 1, %s1186_s21  }
 0x3ee   : > { %p13_p4 = scmp.ge.s32.totalorder %s16_s21, 4  }
 0x3f0   :  { %15 = sbr.rel (!%p13_p4) target bundleno = 1 (0x1), region = 74 }

</bundles_post_ra>
